<compile_context>
chip_gen: v7x
topology: tpu7x:2x2x1
jax: 0.10.0
libtpu: 0.0.40
codegen_flags: <defaults>
</compile_context>

<pallas_src>
import math

import jax
import jax.numpy as jnp
from jax.experimental import pallas as pl
from jax.experimental.pallas import tpu as pltpu


_SQRT_HALF = 0.7071067811865476
_GELU_TANH_C = 0.7978845608028654  # sqrt(2/pi)


def _gelu(x, approx):
    if approx:
        # tanh approximation (EUP) -- optional, default off to match torch.nn.GELU()
        return 0.5 * x * (1.0 + jnp.tanh(_GELU_TANH_C * (x + 0.044715 * x * x * x)))
    return 0.5 * x * (1.0 + jax.lax.erf(x * _SQRT_HALF))


_VMEM_LIMIT_CACHE = []


def _vmem_limit_bytes():
    """Generation-aware scoped-VMEM limit (None -> compiler default)."""
    if not _VMEM_LIMIT_CACHE:
        lim = None
        try:
            cap = getattr(pltpu.get_tpu_info(), "vmem_capacity_bytes", None)
            if cap:
                lim = int(min(cap * 3 // 4, 64 * 1024 * 1024))
        except Exception:
            lim = None
        _VMEM_LIMIT_CACHE.append(lim)
    return _VMEM_LIMIT_CACHE[0]


# ----------------------------------------------------------------------------
# Shared conv body: strided Conv1d (no bias) of one (C_out, TL) output tile.
#
#   x_ref : cin1=False -> (S, C_in, Tblk)     polyphase phases on the leading axis,
#           cin1=True  -> (S, Tblk)           channels (or phases) on sublanes, time
#                                             on lanes.  Tblk = TL (+halo if untiled).
#   h_ref : (S, C_in, halo) / (S, halo) halo columns of the NEXT tile (tiled only).
#   w_ref : mode 'fold' -> (C_out, K*C_in)   (or (C_out, K) when cin1)
#           mode 'tap'  -> (K, C_out, C_in)
# ----------------------------------------------------------------------------
def _conv_block(x_ref, h_ref, w_ref, *, K, S, TL, use_halo, mode,
                compute_dtype, cin1):
    def tap(j):
        q, r = divmod(j, S)
        if cin1:
            if q == 0 or not use_halo:
                xj = x_ref[r:r + 1, q:q + TL]
            else:
                xj = jnp.concatenate(
                    [x_ref[r:r + 1, q:TL], h_ref[r:r + 1, :q]], axis=-1)
        else:
            if q == 0 or not use_halo:
                xj = x_ref[r, :, q:q + TL]
            else:
                xj = jnp.concatenate(
                    [x_ref[r, :, q:TL], h_ref[r, :, :q]], axis=-1)
        return xj.astype(compute_dtype)

    if mode == "fold":
        taps = [tap(j) for j in range(K)]            # K static -> unrolled
        stack = jnp.concatenate(taps, axis=0) if K > 1 else taps[0]
        return jnp.dot(w_ref[...], stack, preferred_element_type=jnp.float32)

    acc = None
    for j in range(K):
        part = jnp.dot(w_ref[j], tap(j), preferred_element_type=jnp.float32)
        acc = part if acc is None else acc + part
    return acc


# ----------------------------------------------------------------------------
# Kernels
# ----------------------------------------------------------------------------
def _make_conv_gelu_kernel(K, S, TL, use_halo, mode, compute_dtype, approx_gelu):
    """Layers >= 1: strided conv + exact GELU for one (C_out, TL) tile."""
    def body(x_ref, h_ref, w_ref, o_ref):
        y = _conv_block(x_ref, h_ref, w_ref, K=K, S=S, TL=TL, use_halo=use_halo,
                        mode=mode, compute_dtype=compute_dtype, cin1=False)
        o_ref[...] = _gelu(y, approx_gelu).astype(o_ref.dtype)

    if use_halo:
        def kernel(x_ref, h_ref, w_ref, o_ref):
            body(x_ref, h_ref, w_ref, o_ref)
    else:
        def kernel(x_ref, w_ref, o_ref):
            body(x_ref, None, w_ref, o_ref)
    return kernel


def _make_l0_stats_kernel(K, S, TL, use_halo, L_out, need_mask, compute_dtype):
    """Layer 0 pass 1: conv + per-channel sum / sumsq accumulated over time tiles."""
    def body(x_ref, h_ref, w_ref, s1_ref, s2_ref):
        t = pl.program_id(1)
        y = _conv_block(x_ref, h_ref, w_ref, K=K, S=S, TL=TL, use_halo=use_halo,
                        mode="fold", compute_dtype=compute_dtype, cin1=True)
        if need_mask:
            col = jax.lax.broadcasted_iota(jnp.int32, (1, TL), 1) + t * TL
            y = jnp.where(col < L_out, y, 0.0)
        s1 = jnp.sum(y, axis=1, keepdims=True)
        s2 = jnp.sum(y * y, axis=1, keepdims=True)

        @pl.when(t == 0)
        def _():
            s1_ref[...] = s1
            s2_ref[...] = s2

        @pl.when(t != 0)
        def _():
            s1_ref[...] = s1_ref[...] + s1
            s2_ref[...] = s2_ref[...] + s2

    if use_halo:
        def kernel(x_ref, h_ref, w_ref, s1_ref, s2_ref):
            body(x_ref, h_ref, w_ref, s1_ref, s2_ref)
    else:
        def kernel(x_ref, w_ref, s1_ref, s2_ref):
            body(x_ref, None, w_ref, s1_ref, s2_ref)
    return kernel


def _make_l0_finalize_kernel(K, S, TL, use_halo, L_out, compute_dtype,
                             approx_gelu, eps=1e-5):
    """Layer 0 pass 2: conv recompute + GroupNorm(groups==channels) + GELU."""
    inv_n = 1.0 / float(L_out)

    def body(x_ref, h_ref, w_ref, s1_ref, s2_ref, g_ref, b_ref, o_ref):
        y = _conv_block(x_ref, h_ref, w_ref, K=K, S=S, TL=TL, use_halo=use_halo,
                        mode="fold", compute_dtype=compute_dtype, cin1=True)
        mean = s1_ref[...] * inv_n
        var = jnp.maximum(s2_ref[...] * inv_n - mean * mean, 0.0)
        y = (y - mean) * jax.lax.rsqrt(var + eps)
        y = y * g_ref[...] + b_ref[...]
        o_ref[...] = _gelu(y, approx_gelu).astype(o_ref.dtype)

    if use_halo:
        def kernel(x_ref, h_ref, w_ref, s1_ref, s2_ref, g_ref, b_ref, o_ref):
            body(x_ref, h_ref, w_ref, s1_ref, s2_ref, g_ref, b_ref, o_ref)
    else:
        def kernel(x_ref, w_ref, s1_ref, s2_ref, g_ref, b_ref, o_ref):
            body(x_ref, None, w_ref, s1_ref, s2_ref, g_ref, b_ref, o_ref)
    return kernel


# ----------------------------------------------------------------------------
# Wrapper glue: single polyphase transpose + tiny halo gather (no halo-duplicated
# activation tensor).
# ----------------------------------------------------------------------------
def _tile_plan(L_out, time_tile):
    if L_out <= time_tile:
        return L_out, 1
    return time_tile, -(-L_out // time_tile)


def _polyphase(x, L_in, K, S, TL, n_t):
    """(N, C, >=L_in) ->
         xr  : (N, S, C, Tpad)         xr[n,r,c,p] = x[n,c,p*S+r]   (0 beyond L_in)
         hal : (N, n_t, S, C, halo)    hal[n,t,r,c,h] = xr[n,r,c,(t+1)*TL+h]
               (None when halo == 0 or the layer is untiled)
    """
    N, C = x.shape[0], x.shape[1]
    halo = (K - 1) // S
    Tpad = n_t * TL + halo
    L_need = Tpad * S

    x = x[:, :, :L_in]
    if L_need > L_in:
        x = jnp.pad(x, ((0, 0), (0, 0), (0, L_need - L_in)))
    else:
        x = x[:, :, :L_need]

    xr = x.reshape(N, C, Tpad, S).transpose(0, 3, 1, 2)          # (N, S, C, Tpad)

    if halo == 0 or n_t == 1:
        return xr, None

    cols = []
    for h in range(halo):
        cols.append(xr[:, :, :, TL + h::TL][:, :, :, :n_t])      # (N, S, C, n_t)
    hal = jnp.stack(cols, axis=-1)                               # (N, S, C, n_t, halo)
    hal = hal.transpose(0, 3, 1, 2, 4)                           # (N, n_t, S, C, halo)
    return xr, hal


# ----------------------------------------------------------------------------
# Layer 0: Conv1d (C_in == 1) + GroupNorm(groups == channels) + GELU, time-tiled.
# ----------------------------------------------------------------------------
def _layer0_gn(x, L_in, w, gamma, beta, *, K, S, time_tile, compute_dtype,
               out_dtype, approx_gelu, vmem_limit):
    N = x.shape[0]
    C_out = w.shape[0]
    halo = (K - 1) // S
    L_out = (L_in - K) // S + 1
    assert L_out >= 1, "input too short for this conv layer"

    TL, n_t = _tile_plan(L_out, time_tile)
    xr, hal = _polyphase(x, L_in, K, S, TL, n_t)      # (N, S, 1, Tpad)
    xr = xr[:, :, 0, :]                               # (N, S, Tpad)  phases on sublanes
    if hal is not None:
        hal = hal[:, :, :, 0, :]                      # (N, n_t, S, halo)
    use_halo = hal is not None

    wk = w[:, 0, :].astype(compute_dtype)             # (C_out, K)
    g = gamma.reshape(C_out, 1).astype(jnp.float32)
    b = beta.reshape(C_out, 1).astype(jnp.float32)

    Tblk = TL if n_t > 1 else xr.shape[-1]            # untiled block covers the halo
    x_spec = pl.BlockSpec((None, xr.shape[1], Tblk), lambda n, t: (n, 0, t))
    w_spec = pl.BlockSpec((C_out, K), lambda n, t: (0, 0))
    s_spec = pl.BlockSpec((None, C_out, 1), lambda n, t: (n, 0, 0))
    gb_spec = pl.BlockSpec((C_out, 1), lambda n, t: (0, 0))

    in_specs = [x_spec]
    args = [xr]
    if use_halo:
        in_specs.append(pl.BlockSpec((None, None, hal.shape[2], halo),
                                     lambda n, t: (n, t, 0, 0)))
        args.append(hal)
    in_specs.append(w_spec)
    args.append(wk)

    stats_shape = jax.ShapeDtypeStruct((N, C_out, 1), jnp.float32)

    # Pass 1: conv + masked sum / sumsq (reduction over the "arbitrary" time axis).
    s1, s2 = pl.pallas_call(
        _make_l0_stats_kernel(K, S, TL, use_halo, L_out, n_t * TL > L_out,
                              compute_dtype),
        out_shape=(stats_shape, stats_shape),
        grid=(N, n_t),
        in_specs=in_specs,
        out_specs=(s_spec, s_spec),
        compiler_params=pltpu.CompilerParams(
            dimension_semantics=("parallel", "arbitrary"),
            vmem_limit_bytes=vmem_limit),
    )(*args)

    # Pass 2: conv recompute + normalize + affine + GELU (fully parallel).
    y = pl.pallas_call(
        _make_l0_finalize_kernel(K, S, TL, use_halo, L_out, compute_dtype,
                                 approx_gelu),
        out_shape=jax.ShapeDtypeStruct((N, C_out, n_t * TL), out_dtype),
        grid=(N, n_t),
        in_specs=in_specs + [s_spec, s_spec, gb_spec, gb_spec],
        out_specs=pl.BlockSpec((None, C_out, TL), lambda n, t: (n, 0, t)),
        compiler_params=pltpu.CompilerParams(
            dimension_semantics=("parallel", "parallel"),
            vmem_limit_bytes=vmem_limit),
    )(*(args + [s1, s2, g, b]))
    return y, L_out


# ----------------------------------------------------------------------------
# Layers >= 1: Conv1d + GELU, time-tiled.
# ----------------------------------------------------------------------------
def _conv_gelu_layer(x, L_in, w, *, K, S, time_tile, fold_max_depth,
                     compute_dtype, out_dtype, approx_gelu, vmem_limit):
    N, C_in = x.shape[0], x.shape[1]
    C_out = w.shape[0]
    halo = (K - 1) // S
    L_out = (L_in - K) // S + 1
    assert L_out >= 1, "input too short for this conv layer"

    TL, n_t = _tile_plan(L_out, time_tile)
    xr, hal = _polyphase(x, L_in, K, S, TL, n_t)      # (N, S, C_in, Tpad)
    use_halo = hal is not None

    # Weight re-layout: K never lands on the lane axis.
    if K * C_in <= fold_max_depth:
        mode = "fold"
        wk = w.transpose(0, 2, 1).reshape(C_out, K * C_in).astype(compute_dtype)
        w_spec = pl.BlockSpec((C_out, K * C_in), lambda n, t: (0, 0))
    else:
        mode = "tap"
        wk = w.transpose(2, 0, 1).astype(compute_dtype)           # (K, C_out, C_in)
        w_spec = pl.BlockSpec((K, C_out, C_in), lambda n, t: (0, 0, 0))

    Tblk = TL if n_t > 1 else xr.shape[-1]
    in_specs = [pl.BlockSpec((None, S, C_in, Tblk), lambda n, t: (n, 0, 0, t))]
    args = [xr]
    if use_halo:
        in_specs.append(pl.BlockSpec((None, None, S, C_in, halo),
                                     lambda n, t: (n, t, 0, 0, 0)))
        args.append(hal)
    in_specs.append(w_spec)
    args.append(wk)

    y = pl.pallas_call(
        _make_conv_gelu_kernel(K, S, TL, use_halo, mode, compute_dtype, approx_gelu),
        out_shape=jax.ShapeDtypeStruct((N, C_out, n_t * TL), out_dtype),
        grid=(N, n_t),
        in_specs=in_specs,
        out_specs=pl.BlockSpec((None, C_out, TL), lambda n, t: (n, 0, t)),
        compiler_params=pltpu.CompilerParams(
            dimension_semantics=("parallel", "parallel"),
            vmem_limit_bytes=vmem_limit),
    )(*args)
    return y, L_out


# ----------------------------------------------------------------------------
# Full FeatureEncoder forward
# ----------------------------------------------------------------------------
def feature_encoder_forward(x, conv_weights, gamma, beta, kernel_sizes, length=None,
                            *, time_tile=512, fold_max_depth=2048,
                            compute_dtype=jnp.bfloat16,
                            activation_dtype=jnp.bfloat16,
                            approx_gelu=False):
    time_tile = max(128, (int(time_tile) // 128) * 128)
    vmem_limit = _vmem_limit_bytes()
    strides = [math.ceil(k / 3 + 1) for k in kernel_sizes]
    n_layers = len(kernel_sizes)

    y, L_cur = x, x.shape[2]
    for i, (w, K, S) in enumerate(zip(conv_weights, kernel_sizes, strides)):
        out_dt = x.dtype if i == n_layers - 1 else activation_dtype
        if i == 0:
            y, L_cur = _layer0_gn(
                y, L_cur, w, gamma, beta, K=K, S=S, time_tile=time_tile,
                compute_dtype=compute_dtype, out_dtype=out_dt,
                approx_gelu=approx_gelu, vmem_limit=vmem_limit)
        else:
            y, L_cur = _conv_gelu_layer(
                y, L_cur, w, K=K, S=S, time_tile=time_tile,
                fold_max_depth=fold_max_depth, compute_dtype=compute_dtype,
                out_dtype=out_dt, approx_gelu=approx_gelu, vmem_limit=vmem_limit)

    y = y[:, :, :L_cur]                       # drop lane padding of the final layer
    if length is not None:
        for K, S in zip(kernel_sizes, strides):
            length = (length - K) // S + 1    # torch.div(..., rounding_mode='floor')
    return y, length


# ----------------------------------------------------------------------------
# Pure-JAX reference (validation only), dtype policy matched to the kernels.
# ----------------------------------------------------------------------------
def _ref_forward(x, conv_weights, gamma, beta, kernel_sizes,
                 compute_dtype, activation_dtype):
    strides = [math.ceil(k / 3 + 1) for k in kernel_sizes]
    n_layers = len(kernel_sizes)
    y = x
    for i, (w, K, S) in enumerate(zip(conv_weights, kernel_sizes, strides)):
        y = jax.lax.conv_general_dilated(
            y.astype(compute_dtype), w.astype(compute_dtype),
            window_strides=(S,), padding="VALID",
            dimension_numbers=("NCH", "OIH", "NCH"),
            preferred_element_type=jnp.float32)
        if i == 0:
            n = y.shape[2]
            s1 = jnp.sum(y, axis=2, keepdims=True)
            s2 = jnp.sum(y * y, axis=2, keepdims=True)
            mean = s1 / n
            var = jnp.maximum(s2 / n - mean * mean, 0.0)
            y = (y - mean) * jax.lax.rsqrt(var + 1e-5)
            y = y * gamma[None, :, None] + beta[None, :, None]
        y = _gelu(y, False)
        if i < n_layers - 1:
            y = y.astype(activation_dtype)
    return y


# ----------------------------------------------------------------------------
# Main
# ----------------------------------------------------------------------------
if __name__ == "__main__":
    kernel_sizes = [10, 3, 3, 3, 3, 2, 2]      # module default
    output_channels = 64                       # small synthetic width (default 512)
    N, L = 2, 4096                             # long enough to exercise time tiling

    key = jax.random.PRNGKey(0)
    keys = jax.random.split(key, len(kernel_sizes) + 3)

    x = jax.random.normal(keys[0], (N, 1, L), jnp.float32)        # Conv1d input (N,1,L)
    length = jnp.array([L, L - 37], dtype=jnp.int32)

    conv_weights = []
    c_in = 1
    for i, k in enumerate(kernel_sizes):
        w = jax.random.normal(keys[i + 1], (output_channels, c_in, k), jnp.float32)
        conv_weights.append(w / math.sqrt(c_in * k))
        c_in = output_channels
    gamma = 1.0 + 0.1 * jax.random.normal(keys[-2], (output_channels,), jnp.float32)
    beta = 0.1 * jax.random.normal(keys[-1], (output_channels,), jnp.float32)

    # ---- strict check: f32 everywhere vs. pure-JAX f32 reference -----------------
    out32, out_len = feature_encoder_forward(
        x, conv_weights, gamma, beta, kernel_sizes, length=length,
        time_tile=128, compute_dtype=jnp.float32, activation_dtype=jnp.float32)
    out32 = jax.block_until_ready(out32)
    out_len = jax.block_until_ready(out_len)
    ref32 = jax.block_until_ready(
        _ref_forward(x, conv_weights, gamma, beta, kernel_sizes,
                     jnp.float32, jnp.float32))
    assert out32.shape == ref32.shape, (out32.shape, ref32.shape)
    err32 = float(jnp.max(jnp.abs(out32 - ref32)))
    assert err32 < 5e-3, f"f32 path max abs error {err32}"

    # ---- fast path: bf16 MXU operands + bf16 intermediate activations ------------
    outbf, _ = feature_encoder_forward(
        x, conv_weights, gamma, beta, kernel_sizes, length=None,
        time_tile=256, compute_dtype=jnp.bfloat16, activation_dtype=jnp.bfloat16)
    outbf = jax.block_until_ready(outbf)
    refbf = jax.block_until_ready(
        _ref_forward(x, conv_weights, gamma, beta, kernel_sizes,
                     jnp.bfloat16, jnp.bfloat16))
    assert outbf.shape == refbf.shape, (outbf.shape, refbf.shape)
    errbf = float(jnp.max(jnp.abs(outbf.astype(jnp.float32)
                                  - refbf.astype(jnp.float32))))
    assert errbf < 5e-2, f"bf16 path max abs error {errbf}"

    # ---- length recurrence --------------------------------------------------------
    exp_len = [L, L - 37]
    for k in kernel_sizes:
        s = math.ceil(k / 3 + 1)
        exp_len = [(v - k) // s + 1 for v in exp_len]
    assert [int(v) for v in out_len] == exp_len, (list(map(int, out_len)), exp_len)

    print("KERNEL_OK")
</pallas_src>

<mosaic_0001>
module attributes {stable_mosaic.version = 11 : i64} {
  func.func @kernel(%arg0: i32, %arg1: i32, %arg2: memref<1x5x128xf32, #tpu.memory_space<vmem>>, %arg3: memref<1x1x5x1xf32, #tpu.memory_space<vmem>>, %arg4: memref<64x10xf32, #tpu.memory_space<vmem>>, %arg5: memref<1x64x1xf32, #tpu.memory_space<vmem>>, %arg6: memref<1x64x1xf32, #tpu.memory_space<vmem>>) attributes {dimension_semantics = [#tpu.dimension_semantics<parallel>, #tpu.dimension_semantics<arbitrary>], iteration_bounds = array<i64: 2, 7>, scalar_prefetch = 0 : i64, scratch_operands = 0 : i64, tpu.core_type = #tpu.core_type<tc>, window_params = [{transform_indices = @transform_0, window_bounds = array<i64: 1, 5, 128>}, {transform_indices = @transform_1, window_bounds = array<i64: 1, 1, 5, 1>}, {pipeline_mode = #tpu.pipeline_mode<synchronous>, transform_indices = @transform_2, window_bounds = array<i64: 64, 10>}, {transform_indices = @transform_3, window_bounds = array<i64: 1, 64, 1>}, {transform_indices = @transform_4, window_bounds = array<i64: 1, 64, 1>}]} {
    %c0 = arith.constant 0 : index
    %c0_0 = arith.constant 0 : index
    %c0_1 = arith.constant 0 : index
    %0 = vector.load %arg2[%c0, %c0_0, %c0_1] : memref<1x5x128xf32, #tpu.memory_space<vmem>>, vector<1x1x128xf32>
    %1 = vector.shape_cast %0 : vector<1x1x128xf32> to vector<1x128xf32>
    %c0_2 = arith.constant 0 : index
    %c1 = arith.constant 1 : index
    %c0_3 = arith.constant 0 : index
    %2 = vector.load %arg2[%c0_2, %c1, %c0_3] : memref<1x5x128xf32, #tpu.memory_space<vmem>>, vector<1x1x128xf32>
    %3 = vector.shape_cast %2 : vector<1x1x128xf32> to vector<1x128xf32>
    %c0_4 = arith.constant 0 : index
    %c2 = arith.constant 2 : index
    %c0_5 = arith.constant 0 : index
    %4 = vector.load %arg2[%c0_4, %c2, %c0_5] : memref<1x5x128xf32, #tpu.memory_space<vmem>>, vector<1x1x128xf32>
    %5 = vector.shape_cast %4 : vector<1x1x128xf32> to vector<1x128xf32>
    %c0_6 = arith.constant 0 : index
    %c3 = arith.constant 3 : index
    %c0_7 = arith.constant 0 : index
    %6 = vector.load %arg2[%c0_6, %c3, %c0_7] : memref<1x5x128xf32, #tpu.memory_space<vmem>>, vector<1x1x128xf32>
    %7 = vector.shape_cast %6 : vector<1x1x128xf32> to vector<1x128xf32>
    %c0_8 = arith.constant 0 : index
    %c4 = arith.constant 4 : index
    %c0_9 = arith.constant 0 : index
    %8 = vector.load %arg2[%c0_8, %c4, %c0_9] : memref<1x5x128xf32, #tpu.memory_space<vmem>>, vector<1x1x128xf32>
    %9 = vector.shape_cast %8 : vector<1x1x128xf32> to vector<1x128xf32>
    %c0_10 = arith.constant 0 : index
    %c0_11 = arith.constant 0 : index
    %c1_12 = arith.constant 1 : index
    %10 = vector.load %arg2[%c0_10, %c0_11, %c1_12] : memref<1x5x128xf32, #tpu.memory_space<vmem>>, vector<1x1x127xf32>
    %11 = vector.shape_cast %10 : vector<1x1x127xf32> to vector<1x127xf32>
    %c0_13 = arith.constant 0 : index
    %c0_14 = arith.constant 0 : index
    %c0_15 = arith.constant 0 : index
    %c0_16 = arith.constant 0 : index
    %12 = vector.load %arg3[%c0_13, %c0_14, %c0_15, %c0_16] : memref<1x1x5x1xf32, #tpu.memory_space<vmem>>, vector<1x1x1x1xf32>
    %13 = vector.shape_cast %12 : vector<1x1x1x1xf32> to vector<1x1xf32>
    %14 = tpu.concatenate %11, %13 in 1 : vector<1x127xf32>, vector<1x1xf32> -> vector<1x128xf32>
    %c0_17 = arith.constant 0 : index
    %c1_18 = arith.constant 1 : index
    %c1_19 = arith.constant 1 : index
    %15 = vector.load %arg2[%c0_17, %c1_18, %c1_19] : memref<1x5x128xf32, #tpu.memory_space<vmem>>, vector<1x1x127xf32>
    %16 = vector.shape_cast %15 : vector<1x1x127xf32> to vector<1x127xf32>
    %c0_20 = arith.constant 0 : index
    %c0_21 = arith.constant 0 : index
    %c1_22 = arith.constant 1 : index
    %c0_23 = arith.constant 0 : index
    %17 = vector.load %arg3[%c0_20, %c0_21, %c1_22, %c0_23] : memref<1x1x5x1xf32, #tpu.memory_space<vmem>>, vector<1x1x1x1xf32>
    %18 = vector.shape_cast %17 : vector<1x1x1x1xf32> to vector<1x1xf32>
    %19 = tpu.concatenate %16, %18 in 1 : vector<1x127xf32>, vector<1x1xf32> -> vector<1x128xf32>
    %c0_24 = arith.constant 0 : index
    %c2_25 = arith.constant 2 : index
    %c1_26 = arith.constant 1 : index
    %20 = vector.load %arg2[%c0_24, %c2_25, %c1_26] : memref<1x5x128xf32, #tpu.memory_space<vmem>>, vector<1x1x127xf32>
    %21 = vector.shape_cast %20 : vector<1x1x127xf32> to vector<1x127xf32>
    %c0_27 = arith.constant 0 : index
    %c0_28 = arith.constant 0 : index
    %c2_29 = arith.constant 2 : index
    %c0_30 = arith.constant 0 : index
    %22 = vector.load %arg3[%c0_27, %c0_28, %c2_29, %c0_30] : memref<1x1x5x1xf32, #tpu.memory_space<vmem>>, vector<1x1x1x1xf32>
    %23 = vector.shape_cast %22 : vector<1x1x1x1xf32> to vector<1x1xf32>
    %24 = tpu.concatenate %21, %23 in 1 : vector<1x127xf32>, vector<1x1xf32> -> vector<1x128xf32>
    %c0_31 = arith.constant 0 : index
    %c3_32 = arith.constant 3 : index
    %c1_33 = arith.constant 1 : index
    %25 = vector.load %arg2[%c0_31, %c3_32, %c1_33] : memref<1x5x128xf32, #tpu.memory_space<vmem>>, vector<1x1x127xf32>
    %26 = vector.shape_cast %25 : vector<1x1x127xf32> to vector<1x127xf32>
    %c0_34 = arith.constant 0 : index
    %c0_35 = arith.constant 0 : index
    %c3_36 = arith.constant 3 : index
    %c0_37 = arith.constant 0 : index
    %27 = vector.load %arg3[%c0_34, %c0_35, %c3_36, %c0_37] : memref<1x1x5x1xf32, #tpu.memory_space<vmem>>, vector<1x1x1x1xf32>
    %28 = vector.shape_cast %27 : vector<1x1x1x1xf32> to vector<1x1xf32>
    %29 = tpu.concatenate %26, %28 in 1 : vector<1x127xf32>, vector<1x1xf32> -> vector<1x128xf32>
    %c0_38 = arith.constant 0 : index
    %c4_39 = arith.constant 4 : index
    %c1_40 = arith.constant 1 : index
    %30 = vector.load %arg2[%c0_38, %c4_39, %c1_40] : memref<1x5x128xf32, #tpu.memory_space<vmem>>, vector<1x1x127xf32>
    %31 = vector.shape_cast %30 : vector<1x1x127xf32> to vector<1x127xf32>
    %c0_41 = arith.constant 0 : index
    %c0_42 = arith.constant 0 : index
    %c4_43 = arith.constant 4 : index
    %c0_44 = arith.constant 0 : index
    %32 = vector.load %arg3[%c0_41, %c0_42, %c4_43, %c0_44] : memref<1x1x5x1xf32, #tpu.memory_space<vmem>>, vector<1x1x1x1xf32>
    %33 = vector.shape_cast %32 : vector<1x1x1x1xf32> to vector<1x1xf32>
    %34 = tpu.concatenate %31, %33 in 1 : vector<1x127xf32>, vector<1x1xf32> -> vector<1x128xf32>
    %35 = tpu.concatenate %1, %3, %5, %7, %9, %14, %19, %24, %29, %34 in 0 : vector<1x128xf32>, vector<1x128xf32>, vector<1x128xf32>, vector<1x128xf32>, vector<1x128xf32>, vector<1x128xf32>, vector<1x128xf32>, vector<1x128xf32>, vector<1x128xf32>, vector<1x128xf32> -> vector<10x128xf32>
    %c0_45 = arith.constant 0 : index
    %c0_46 = arith.constant 0 : index
    %36 = vector.load %arg4[%c0_45, %c0_46] : memref<64x10xf32, #tpu.memory_space<vmem>>, vector<64x10xf32>
    %cst = arith.constant dense<0.000000e+00> : vector<64x128xf32>
    %37 = tpu.matmul %36, %35, %cst {dimension_numbers = #tpu.dot_dimension_numbers<[1], [0], [0], [1], [0, 0, 1, 1], [], []>} : vector<64x10xf32>, vector<10x128xf32>, vector<64x128xf32> -> vector<64x128xf32>
    %38 = tpu.iota {dimensions = array<i32: 1>} : vector<1x128xi32>
    %c128_i32 = arith.constant 128 : i32
    %39 = arith.muli %arg1, %c128_i32 : i32
    %40 = vector.broadcast %39 : i32 to vector<1x128xi32>
    %41 = arith.addi %38, %40 : vector<1x128xi32>
    %c818_i32 = arith.constant 818 : i32
    %42 = vector.broadcast %c818_i32 : i32 to vector<1x128xi32>
    %43 = arith.cmpi slt, %41, %42 : vector<1x128xi32>
    %cst_47 = arith.constant 0.000000e+00 : f32
    %44 = vector.shape_cast %43 : vector<1x128xi1> to vector<1x128xi1>
    %45 = vector.broadcast %44 : vector<1x128xi1> to vector<64x128xi1>
    %46 = vector.broadcast %cst_47 : f32 to vector<64x128xf32>
    %47 = arith.select %45, %37, %46 : vector<64x128xi1>, vector<64x128xf32>
    %cst_48 = arith.constant dense<0.000000e+00> : vector<64xf32>
    %48 = vector.multi_reduction <add>, %47, %cst_48 [1] : vector<64x128xf32> to vector<64xf32>
    %49 = vector.shape_cast %48 : vector<64xf32> to vector<64x1xf32>
    %50 = arith.mulf %47, %47 : vector<64x128xf32>
    %cst_49 = arith.constant dense<0.000000e+00> : vector<64xf32>
    %51 = vector.multi_reduction <add>, %50, %cst_49 [1] : vector<64x128xf32> to vector<64xf32>
    %52 = vector.shape_cast %51 : vector<64xf32> to vector<64x1xf32>
    %c0_i32 = arith.constant 0 : i32
    %53 = arith.cmpi eq, %arg1, %c0_i32 : i32
    %54 = arith.extui %53 : i1 to i32
    %c0_i32_50 = arith.constant 0 : i32
    %55 = arith.cmpi ne, %54, %c0_i32_50 : i32
    scf.if %55 {
      %c0_53 = arith.constant 0 : index
      %c0_54 = arith.constant 0 : index
      %c0_55 = arith.constant 0 : index
      %59 = vector.load %arg5[%c0_53, %c0_54, %c0_55] : memref<1x64x1xf32, #tpu.memory_space<vmem>>, vector<1x64x1xf32>
      %60 = vector.shape_cast %59 : vector<1x64x1xf32> to vector<64x1xf32>
      %61 = vector.shape_cast %49 : vector<64x1xf32> to vector<1x64x1xf32>
      tpu.vector_store %arg5[%c0_53, %c0_54, %c0_55], %61 {strides = array<i32>} : memref<1x64x1xf32, #tpu.memory_space<vmem>>, vector<1x64x1xf32>,
      %c0_56 = arith.constant 0 : index
      %c0_57 = arith.constant 0 : index
      %c0_58 = arith.constant 0 : index
      %62 = vector.load %arg6[%c0_56, %c0_57, %c0_58] : memref<1x64x1xf32, #tpu.memory_space<vmem>>, vector<1x64x1xf32>
      %63 = vector.shape_cast %62 : vector<1x64x1xf32> to vector<64x1xf32>
      %64 = vector.shape_cast %52 : vector<64x1xf32> to vector<1x64x1xf32>
      tpu.vector_store %arg6[%c0_56, %c0_57, %c0_58], %64 {strides = array<i32>} : memref<1x64x1xf32, #tpu.memory_space<vmem>>, vector<1x64x1xf32>,
    } else {
    }
    %c0_i32_51 = arith.constant 0 : i32
    %56 = arith.cmpi ne, %arg1, %c0_i32_51 : i32
    %57 = arith.extui %56 : i1 to i32
    %c0_i32_52 = arith.constant 0 : i32
    %58 = arith.cmpi ne, %57, %c0_i32_52 : i32
    scf.if %58 {
      %c0_53 = arith.constant 0 : index
      %c0_54 = arith.constant 0 : index
      %c0_55 = arith.constant 0 : index
      %59 = vector.load %arg5[%c0_53, %c0_54, %c0_55] : memref<1x64x1xf32, #tpu.memory_space<vmem>>, vector<1x64x1xf32>
      %60 = vector.shape_cast %59 : vector<1x64x1xf32> to vector<64x1xf32>
      %61 = arith.addf %60, %49 : vector<64x1xf32>
      %c0_56 = arith.constant 0 : index
      %c0_57 = arith.constant 0 : index
      %c0_58 = arith.constant 0 : index
      %62 = vector.load %arg5[%c0_56, %c0_57, %c0_58] : memref<1x64x1xf32, #tpu.memory_space<vmem>>, vector<1x64x1xf32>
      %63 = vector.shape_cast %62 : vector<1x64x1xf32> to vector<64x1xf32>
      %64 = vector.shape_cast %61 : vector<64x1xf32> to vector<1x64x1xf32>
      tpu.vector_store %arg5[%c0_56, %c0_57, %c0_58], %64 {strides = array<i32>} : memref<1x64x1xf32, #tpu.memory_space<vmem>>, vector<1x64x1xf32>,
      %c0_59 = arith.constant 0 : index
      %c0_60 = arith.constant 0 : index
      %c0_61 = arith.constant 0 : index
      %65 = vector.load %arg6[%c0_59, %c0_60, %c0_61] : memref<1x64x1xf32, #tpu.memory_space<vmem>>, vector<1x64x1xf32>
      %66 = vector.shape_cast %65 : vector<1x64x1xf32> to vector<64x1xf32>
      %67 = arith.addf %66, %52 : vector<64x1xf32>
      %c0_62 = arith.constant 0 : index
      %c0_63 = arith.constant 0 : index
      %c0_64 = arith.constant 0 : index
      %68 = vector.load %arg6[%c0_62, %c0_63, %c0_64] : memref<1x64x1xf32, #tpu.memory_space<vmem>>, vector<1x64x1xf32>
      %69 = vector.shape_cast %68 : vector<1x64x1xf32> to vector<64x1xf32>
      %70 = vector.shape_cast %67 : vector<64x1xf32> to vector<1x64x1xf32>
      tpu.vector_store %arg6[%c0_62, %c0_63, %c0_64], %70 {strides = array<i32>} : memref<1x64x1xf32, #tpu.memory_space<vmem>>, vector<1x64x1xf32>,
    } else {
    }
    return
  }
  func.func @transform_0(%arg0: i32, %arg1: i32) -> (i32, i32, i32) {
    %c0_i32 = arith.constant 0 : i32
    %c0_i32_0 = arith.constant 0 : i32
    return %arg0, %c0_i32, %arg1 : i32, i32, i32
  }
  func.func @transform_1(%arg0: i32, %arg1: i32) -> (i32, i32, i32, i32) {
    %c0_i32 = arith.constant 0 : i32
    %c0_i32_0 = arith.constant 0 : i32
    %c0_i32_1 = arith.constant 0 : i32
    return %arg0, %arg1, %c0_i32, %c0_i32_0 : i32, i32, i32, i32
  }
  func.func @transform_2(%arg0: i32, %arg1: i32) -> (i32, i32) {
    %c0_i32 = arith.constant 0 : i32
    %c0_i32_0 = arith.constant 0 : i32
    %c0_i32_1 = arith.constant 0 : i32
    return %c0_i32, %c0_i32_0 : i32, i32
  }
  func.func @transform_3(%arg0: i32, %arg1: i32) -> (i32, i32, i32) {
    %c0_i32 = arith.constant 0 : i32
    %c0_i32_0 = arith.constant 0 : i32
    %c0_i32_1 = arith.constant 0 : i32
    return %arg0, %c0_i32, %c0_i32_0 : i32, i32, i32
  }
  func.func @transform_4(%arg0: i32, %arg1: i32) -> (i32, i32, i32) {
    %c0_i32 = arith.constant 0 : i32
    %c0_i32_0 = arith.constant 0 : i32
    %c0_i32_1 = arith.constant 0 : i32
    return %arg0, %c0_i32, %c0_i32_0 : i32, i32, i32
  }
}

</mosaic_0001>

<bundles_post_ra>
// kernel: tpu_custom_call.1
= control target key start
LH: loop header
LB: loop body
LE: loop exit
PB: predicated region body
PF: predicated region fallthrough
CT: control target
= control target key end

     0   :  { %s947_s15 = smov 0   ;;  %s949_s16 = smov 0   ;;  %s1158_s0 = inlined_call_operand.vmem [shape: f32[2,5,897], index: 0, kind: input, shape index: {}]   ;;  %s1159_s1 = inlined_call_operand.vmem [shape: f32[2,7,5,1], index: 1, kind: input, shape index: {}]   ;;  %s1160_s2 = inlined_call_operand.vmem [shape: f32[64,10], index: 2, kind: input, shape index: {}]   ;;  %s1161_s3 = inlined_call_operand.vmem [shape: f32[2,64,1], index: 3, kind: output, shape index: {0}]   ;;  %s1162_s4 = inlined_call_operand.vmem [shape: f32[2,64,1], index: 4, kind: output, shape index: {1}]  }
   0x1   :  { %s951_s17 = smov 0   ;;  %s953_s18 = smov 0  }
   0x2   :  { %s955_s19 = smov 0  }
   0x3 LB: > { %s24_s20 = sadd.s32 1, %s910_s17  ;;  %s27_s21 = sadd.s32 1, %s914_s18  ;;  %s918_s19 = sphi %s955_s19, %s15_s19   ;;  %s914_s18 = sphi %s953_s18, %s1166_s18   ;;  %s910_s17 = sphi %s951_s17, %s1165_s17   ;;  %s906_s16 = sphi %s949_s16, %s1164_s16   ;;  %s902_s15 = sphi %s947_s15, %s1163_s15  }
   0x4   : > { %p25_p0 = scmp.ge.s32.totalorder %s24_s20, 7  ;;  %p754_p1 = scmp.ge.s32.totalorder %s918_s19, 1 }
   0x5   : > { %p197_p2 = scmp.lt.s32.totalorder %s918_s19, 15 }
   0x6   : > { %s1168_s20 = smov (%p25_p0, %s24_s20), 0  ;;  %s1170_s21 = smov (!%p25_p0, %s27_s21), %s914_s18 }
   0x7   : > { %p198_p3 = pnand %p754_p1, %p197_p2  ;;  %p29_p4 = scmp.ge.s32.totalorder %s1170_s21, 2 }
   0x8   : > { %p239_p5 = scmp.lt.s32.totalorder (!%p198_p3), %s906_s16, 1  ;;  %p241_p6 = scmp.lt.s32.totalorder (!%p198_p3), %s902_s15, 7  ;;  %vm341_vm0 = vcmask (!%p198_p3), 1040384   ;;  %vm343_vm1 = vcmask (!%p198_p3), 1041408   ;;  %vm345_vm2 = vcmask (!%p198_p3), 1042432   ;;  %vm347_vm3 = vcmask (!%p198_p3), 1043456  }
   0x9   : > { %s1172_s21 = smov (%p29_p4, %s1170_s21), 0  ;;  %201 = sbr.rel (%p198_p3) target bundleno = 559 (0x22f), region = 32 }
   0xa   : > { %p249_p7 = scmp.lt.s32.totalorder (!%p198_p3), %s902_s15, 6  ;;  %v356_v22 = vld [vmem:[%s1160_s2] sm:$0xff] (!%p198_p3)  ;;  %vm364_vm4 = vcmask (!%p198_p3), 80896   ;;  %vm279_vm5 = vcmask (!%p198_p3), 1039360   ;;  %vm349_vm6 = vcmask (!%p198_p3), 1044480   ;;  %vm351_vm7 = vcmask (!%p198_p3), 1045504  }
   0xb   : > { %v360_v23 = vld [vmem:[%s1160_s2 + $0x20] sm:$0xff] (!%p198_p3)  ;;  %792 = vmatprep.mubr.msk.f32.mxu0 (!%p198_p3), %vm364_vm4, %v356_v22  ;;  %vm353_vm8 = vcmask (!%p198_p3), 1046528   ;;  %vm921_vm9 = vmmov (!%p198_p3), 1   ;;  %v357_v54 = vld [vmem:[%s1160_s2 + $0x8] sm:$0xff] (!%p198_p3)  ;;  %v358_v56 = vld [vmem:[%s1160_s2 + $0x10] sm:$0xff] (!%p198_p3)  ;;  %v497_v60 = vlaneseq (!%p198_p3)  ;;  %p772_p8 = scmp.ne.s32.totalorder (!%p198_p3), %s902_s15, 0 }
   0xc   : > { %798 = vmatprep.mubr.msk.f32.mxu1 (!%p198_p3), %vm364_vm4, %v360_v23  ;;  %vm805_vm10 = vmpackc.low (!%p198_p3), %vm343_vm1, %vm921_vm9  ;;  %v361_v55 = vld [vmem:[%s1160_s2 + $0x28] sm:$0xff] (!%p198_p3)  ;;  %v362_v57 = vld [vmem:[%s1160_s2 + $0x30] sm:$0xff] (!%p198_p3) }
   0xd   : > { %v359_v58 = vld [vmem:[%s1160_s2 + $0x18] sm:$0xff] (!%p198_p3)  ;;  %v498_v61 = vand.u32 (!%p198_p3), 127, %v497_v60 }
   0xe   : > { %v363_v59 = vld [vmem:[%s1160_s2 + $0x38] sm:$0xff] (!%p198_p3) }
  0x10   : > { %s1174_s16 = smov (!%p239_p5, %s906_s16), 1  ;;  %vm557_vm12 = vcmask (!%p772_p8), 7168  }
  0x11   : > { %s242_s22 = scalar_select %p241_p6, %s902_s15, 7 }
  0x12   : > { %s755_s23 = sshll.u32 %s1174_s16, 3  ;;  %s812_s24 = smul.u32 7, %s1174_s16 }
  0x13   : > { %s244_s25 = sadd.s32 %s755_s23, %s242_s22  ;;  %s776_s26 = sshll.u32 %s1174_s16, 6 }
  0x14   : > { %s756_s27 = sshll.u32 %s244_s25, 3  ;;  %s985_s30 = scalar_lea.vmem %s1161_s3, %s776_s26 }
  0x15   : > { %s246_s7 = scalar_lea.vmem %s1158_s0, %s756_s27  ;;  %s993_s10 = scalar_lea.vmem %s1162_s4, %s776_s26 }
  0x16   : > { %s250_s11 = scalar_select %p249_p7, %s902_s15, 6  ;;  %v266_v0 = vld [vmem:[%s246_s7 + $0x1] sm:$0x1]  ;;  %v267_v2 = vld [vmem:[%s246_s7 + $0x2] sm:$0x1] }
  0x17   : > { %v321_v1 = vrot.slane %v266_v0, 7  ;;  %v269_v3 = vld [vmem:[%s246_s7 + $0x4] sm:$0x1]  ;;  %v265_v4 = vld [vmem:[%s246_s7] sm:$0x1]  ;;  %v323_v5 = vrot.slane %v267_v2, 6 }
  0x18   : > { %s252_s12 = sadd.s32 %s812_s24, %s250_s11  ;;  %v327_v6 = vrot.slane %v269_v3, 4  ;;  %v268_v7 = vld [vmem:[%s246_s7 + $0x3] sm:$0x1]  ;;  %s920_s23 = smov 127  }
  0x19   : > { %s757_s13 = sshll.u32 %s252_s12, 3  ;;  %v342_v8 = vsel %vm341_vm0, %v265_v4, %v321_v1  ;;  %v325_v9 = vrot.slane %v268_v7, 5 }
  0x1a   : > { %s254_s22 = scalar_lea.vmem %s1159_s1, %s757_s13  ;;  %v344_v10 = vsel %vm343_vm1, %v342_v8, %v323_v5 }
  0x1b   : > { %v270_v11 = vld [vmem:[%s254_s22] sm:$0x1]  ;;  %v291_v12 = vld [vmem:[%s254_s22 + $0x2] sm:$0x1]  ;;  %v281_v13 = vld [vmem:[%s254_s22 + $0x1] sm:$0x1]  ;;  %v346_v14 = vsel %vm345_vm2, %v344_v10, %v325_v9 }
  0x1c   : > { %v855_v15 = vpack.i.bf16 %v270_v11, %v265_v4  ;;  %v865_v16 = vpack.i.bf16 %v291_v12, %v267_v2  ;;  %v311_v17 = vld [vmem:[%s254_s22 + $0x4] sm:$0x1]  ;;  %v348_v18 = vsel %vm347_vm3, %v346_v14, %v327_v6  ;;  %v860_v19 = vpack.i.bf16 %v281_v13, %v266_v0  ;;  %v301_v21 = vld [vmem:[%s254_s22 + $0x3] sm:$0x1]  ;;  %s771_s22 = sshll.u32 %s902_s15, 7 }
  0x1d   : > { %v870_v20 = vpack.i.bf16 %v311_v17, %v269_v3  ;;  %v875_v24 = vpack.i.bf16 %v301_v21, %v268_v7  ;;  %v500_v62 = vstv %s771_s22 }
  0x1e   : > { %856 = vrot.lane.b32.xlu0 %v855_v15, %s920_s23  ;;  %866 = vrot.lane.b32.xlu1 %v865_v16, %s920_s23  ;;  %v501_v63 = vadd.s32 %v500_v62, %v498_v61 }
  0x20   : > { %vm502_vm11 = vcmp.lt.s32.totalorder %v501_v63, 818 }
  0x22   : > { %861 = vrot.lane.b32.xlu0 %v860_v19, %s920_s23  ;;  %871 = vrot.lane.b32.xlu1 %v870_v20, %s920_s23 }
  0x26   : > { %876 = vrot.lane.b32.xlu0 %v875_v24, %s920_s23 }
  0x90   : > { %v857_v25 = vpop.permute.xlu0 %856  ;;  %v867_v26 = vpop.permute.xlu1 %866 }
  0x91   : > { %v859_v27 = vunpack.i.h.bf16 %v857_v25  ;;  %v858_v28 = vunpack.i.l.bf16 %v857_v25  ;;  %v869_v29 = vunpack.i.h.bf16 %v867_v26  ;;  %v868_v30 = vunpack.i.l.bf16 %v867_v26 }
  0x93   : > { %v280_v31 = vsel %vm279_vm5, %v858_v28, %v859_v27  ;;  %v300_v39 = vsel %vm279_vm5, %v868_v30, %v869_v29 }
  0x94   : > { %v330_v32 = vrot.slane %v280_v31, 3  ;;  %v862_v33 = vpop.permute.xlu0 %861  ;;  %v872_v34 = vpop.permute.xlu1 %871  ;;  %v336_v45 = vrot.slane %v300_v39, 1 }
  0x95   : > { %v864_v35 = vunpack.i.h.bf16 %v862_v33  ;;  %v863_v36 = vunpack.i.l.bf16 %v862_v33  ;;  %v874_v37 = vunpack.i.h.bf16 %v872_v34  ;;  %v873_v38 = vunpack.i.l.bf16 %v872_v34 }
  0x96   : > { %v350_v48 = vsel %vm349_vm6, %v348_v18, %v330_v32 }
  0x97   : > { %v290_v40 = vsel %vm279_vm5, %v863_v36, %v864_v35  ;;  %v320_v41 = vsel %vm279_vm5, %v873_v38, %v874_v37 }
  0x98   : > { %v333_v42 = vrot.slane %v290_v40, 2  ;;  %v339_v43 = vrot.slane %v320_v41, 7  ;;  %v877_v44 = vpop.permute.xlu0 %876 }
  0x99   : > { %v879_v46 = vunpack.i.h.bf16 %v877_v44  ;;  %v878_v47 = vunpack.i.l.bf16 %v877_v44 }
  0x9a   : > { %v352_v49 = vsel %vm351_vm7, %v350_v48, %v333_v42 }
  0x9b   : > { %v310_v50 = vsel %vm279_vm5, %v878_v47, %v879_v46  ;;  %v354_v51 = vsel %vm353_vm8, %v352_v49, %v336_v45 }
  0x9c   : > { %v355_v52 = vsel %vm341_vm0, %v310_v50, %v339_v43 }
  0x9d   : > { %v804_v53 = vpack.c.bf16 %v355_v52, %v354_v51 }
  0x9f   : > { %806 = vmatprep.subr.msk.bf16.mxu0 %vm805_vm10, %v804_v53  ;;  %810 = vmatprep.subr.msk.bf16.mxu1 %vm805_vm10, %v804_v53 }
  0xa0   : > { %809 = vmatpush3.bf16.msk.msra.mxu0 %vm805_vm10, %v804_v53  ;;  %811 = vmatpush3.bf16.msk.msra.mxu1 %vm805_vm10, %v804_v53 }
  0xa3   : > { %793 = vmatmul.mubr.msk.f32.vlgmr.msra.gmra.mrb[0].mxu0 %vm364_vm4, %v357_v54  ;;  %799 = vmatmul.mubr.msk.f32.vlgmr.msra.gmra.mrb[0].mxu1 %vm364_vm4, %v361_v55 }
  0xa4   : > { %795 = vmatprep.mubr.msk.f32.mxu0 %vm364_vm4, %v358_v56  ;;  %801 = vmatprep.mubr.msk.f32.mxu1 %vm364_vm4, %v362_v57 }
  0xa7   : > { %796 = vmatmul.mubr.msk.f32.gmra.mrb[2].mxu0 %vm364_vm4, %v359_v58  ;;  %802 = vmatmul.mubr.msk.f32.gmra.mrb[2].mxu1 %vm364_vm4, %v363_v59 }
 0x176   : > { %v794_v0 = vpop.f32.mrb[0].mxu0  ;;  %v800_v1 = vpop.f32.mrb[0].mxu1 }
 0x177   : > { %v458_v2 = vpop.f32.mrb[1].mxu0  ;;  %v478_v3 = vpop.f32.mrb[1].mxu1  ;;  %v510_v4 = vsel %vm502_vm11, %v800_v1, 0.0  ;;  %v506_v5 = vsel %vm502_vm11, %v794_v0, 0.0 }
 0x178   : > { %523 = vadd.xlane.f32.xlu1 %v510_v4  ;;  %515 = vadd.xlane.f32.xlu0 %v506_v5  ;;  %v509_v8 = vsel %vm502_vm11, %v478_v3, 0.0  ;;  %v505_v9 = vsel %vm502_vm11, %v458_v2, 0.0  ;;  %v530_v12 = vmul.f32 %v506_v5, %v506_v5  ;;  %v534_v14 = vmul.f32 %v510_v4, %v510_v4 }
 0x179   : > { %v529_v13 = vmul.f32 %v505_v9, %v505_v9  ;;  %v533_v15 = vmul.f32 %v509_v8, %v509_v8 }
 0x17a   : > { %v797_v6 = vpop.f32.mrb[2].mxu0  ;;  %v803_v7 = vpop.f32.mrb[2].mxu1 }
 0x17b   : > { %v468_v10 = vpop.f32.mrb[3].mxu0  ;;  %v488_v11 = vpop.f32.mrb[3].mxu1  ;;  %v508_v16 = vsel %vm502_vm11, %v797_v6, 0.0  ;;  %v512_v18 = vsel %vm502_vm11, %v803_v7, 0.0 }
 0x17c   : > { %521 = vadd.xlane.f32.xlu0 %v509_v8  ;;  %513 = vadd.xlane.f32.xlu1 %v505_v9  ;;  %v507_v17 = vsel %vm502_vm11, %v468_v10, 0.0  ;;  %v511_v19 = vsel %vm502_vm11, %v488_v11, 0.0  ;;  %v532_v20 = vmul.f32 %v508_v16, %v508_v16  ;;  %v536_v22 = vmul.f32 %v512_v18, %v512_v18 }
 0x17d   : > { %v531_v21 = vmul.f32 %v507_v17, %v507_v17  ;;  %v535_v23 = vmul.f32 %v511_v19, %v511_v19 }
 0x180   : > { %539 = vadd.xlane.f32.xlu1 %v530_v12  ;;  %537 = vadd.xlane.f32.xlu0 %v529_v13 }
 0x184   : > { %547 = vadd.xlane.f32.xlu1 %v534_v14  ;;  %545 = vadd.xlane.f32.xlu0 %v533_v15 }
 0x188   : > { %519 = vadd.xlane.f32.xlu1 %v508_v16  ;;  %517 = vadd.xlane.f32.xlu0 %v507_v17 }
 0x18c   : > { %527 = vadd.xlane.f32.xlu1 %v512_v18  ;;  %525 = vadd.xlane.f32.xlu0 %v511_v19 }
 0x190   : > { %543 = vadd.xlane.f32.xlu1 %v532_v20  ;;  %541 = vadd.xlane.f32.xlu0 %v531_v21 }
 0x194   : > { %551 = vadd.xlane.f32.xlu1 %v536_v22  ;;  %549 = vadd.xlane.f32.xlu0 %v535_v23 }
 0x205   : > { %v524_v24 = vpop.xlane.xlu1 %523  ;;  %v516_v25 = vpop.xlane.xlu0 %515 }
 0x206   : > { %559 = vst.msk [vmem:[%s985_s30 + $0x8] sm:$0xff] (!%p772_p8), %vm557_vm12, %v516_v25  ;;  %563 = vst.msk [vmem:[%s985_s30 + $0x28] sm:$0xff] (!%p772_p8), %vm557_vm12, %v524_v24 }
 0x209   : > { %v522_v26 = vpop.xlane.xlu0 %521  ;;  %v514_v27 = vpop.xlane.xlu1 %513 }
 0x20a   : > { %558 = vst.msk [vmem:[%s985_s30] sm:$0xff] (!%p772_p8), %vm557_vm12, %v514_v27  ;;  %562 = vst.msk [vmem:[%s985_s30 + $0x20] sm:$0xff] (!%p772_p8), %vm557_vm12, %v522_v26 }
 0x20d   : > { %v540_v28 = vpop.xlane.xlu1 %539  ;;  %v538_v29 = vpop.xlane.xlu0 %537 }
 0x20e   : > { %566 = vst.msk [vmem:[%s993_s10] sm:$0xff] (!%p772_p8), %vm557_vm12, %v538_v29  ;;  %567 = vst.msk [vmem:[%s993_s10 + $0x8] sm:$0xff] (!%p772_p8), %vm557_vm12, %v540_v28 }
 0x211   : > { %v1049_v30 = vpop.xlane.xlu1 %547  ;;  %v1051_v31 = vpop.xlane.xlu0 %545 }
 0x212   : > { %570 = vst.msk [vmem:[%s993_s10 + $0x20] sm:$0xff] (!%p772_p8), %vm557_vm12, %v1051_v31  ;;  %571 = vst.msk [vmem:[%s993_s10 + $0x28] sm:$0xff] (!%p772_p8), %vm557_vm12, %v1049_v30 }
 0x215   : > { %v520_v32 = vpop.xlane.xlu1 %519  ;;  %v518_v33 = vpop.xlane.xlu0 %517 }
 0x216   : > { %560 = vst.msk [vmem:[%s985_s30 + $0x10] sm:$0xff] (!%p772_p8), %vm557_vm12, %v518_v33  ;;  %561 = vst.msk [vmem:[%s985_s30 + $0x18] sm:$0xff] (!%p772_p8), %vm557_vm12, %v520_v32 }
 0x219   : > { %v528_v34 = vpop.xlane.xlu1 %527  ;;  %v526_v35 = vpop.xlane.xlu0 %525 }
 0x21a   : > { %564 = vst.msk [vmem:[%s985_s30 + $0x30] sm:$0xff] (!%p772_p8), %vm557_vm12, %v526_v35  ;;  %565 = vst.msk [vmem:[%s985_s30 + $0x38] sm:$0xff] (!%p772_p8), %vm557_vm12, %v528_v34 }
 0x21b   : > { %556 = sbr.rel (%p772_p8) target bundleno = 547 (0x223), region = 36 }
 0x21d   : > { %v544_v36 = vpop.xlane.xlu1 %543  ;;  %v542_v37 = vpop.xlane.xlu0 %541 }
 0x21e   : > { %568 = vst.msk [vmem:[%s993_s10 + $0x10] sm:$0xff] (!%p772_p8), %vm557_vm12, %v542_v37  ;;  %569 = vst.msk [vmem:[%s993_s10 + $0x18] sm:$0xff] (!%p772_p8), %vm557_vm12, %v544_v36 }
 0x221   : > { %v1053_v38 = vpop.xlane.xlu1 %551  ;;  %v550_v39 = vpop.xlane.xlu0 %549 }
 0x222   : > { %572 = vst.msk [vmem:[%s993_s10 + $0x30] sm:$0xff] %vm557_vm12, %v550_v39  ;;  %573 = vst.msk [vmem:[%s993_s10 + $0x38] sm:$0xff] %vm557_vm12, %v1053_v38 }
 0x223 PF: > { %p773_p9 = scmp.eq.s32.totalorder %s902_s15, 0 }
 0x224   : > { %v578_v40 = vld [vmem:[%s985_s30] sm:$0xff] (!%p773_p9)  ;;  %vm594_vm13 = vcmask (!%p773_p9), 7168   ;;  %v579_v41 = vld [vmem:[%s985_s30 + $0x8] sm:$0xff] (!%p773_p9)  ;;  %v580_v42 = vld [vmem:[%s985_s30 + $0x10] sm:$0xff] (!%p773_p9) }
 0x225   : > { %577 = sbr.rel (%p773_p9) target bundleno = 559 (0x22f), region = 40  ;;  %v586_v43 = vadd.f32 (!%p773_p9), %v578_v40, %v514_v27  ;;  %v587_v44 = vadd.f32 (!%p773_p9), %v579_v41, %v516_v25  ;;  %v588_v45 = vadd.f32 (!%p773_p9), %v580_v42, %v518_v33  ;;  %v581_v46 = vld [vmem:[%s985_s30 + $0x18] sm:$0xff] (!%p773_p9)  ;;  %v582_v47 = vld [vmem:[%s985_s30 + $0x20] sm:$0xff] (!%p773_p9)  ;;  %v583_v48 = vld [vmem:[%s985_s30 + $0x28] sm:$0xff] (!%p773_p9) }
 0x226   : > { %v589_v49 = vadd.f32 (!%p773_p9), %v581_v46, %v520_v32  ;;  %v590_v50 = vadd.f32 (!%p773_p9), %v582_v47, %v522_v26  ;;  %v591_v51 = vadd.f32 (!%p773_p9), %v583_v48, %v524_v24  ;;  %v584_v52 = vld [vmem:[%s985_s30 + $0x30] sm:$0xff] (!%p773_p9)  ;;  %v585_v53 = vld [vmem:[%s985_s30 + $0x38] sm:$0xff] (!%p773_p9)  ;;  %v603_v54 = vld [vmem:[%s993_s10] sm:$0xff] (!%p773_p9) }
 0x227   : > { %595 = vst.msk [vmem:[%s985_s30] sm:$0xff] (!%p773_p9), %vm594_vm13, %v586_v43  ;;  %596 = vst.msk [vmem:[%s985_s30 + $0x8] sm:$0xff] (!%p773_p9), %vm594_vm13, %v587_v44  ;;  %v592_v55 = vadd.f32 (!%p773_p9), %v584_v52, %v526_v35  ;;  %v593_v56 = vadd.f32 (!%p773_p9), %v585_v53, %v528_v34  ;;  %v611_v57 = vadd.f32 (!%p773_p9), %v603_v54, %v538_v29  ;;  %v604_v58 = vld [vmem:[%s993_s10 + $0x8] sm:$0xff] (!%p773_p9)  ;;  %v605_v59 = vld [vmem:[%s993_s10 + $0x10] sm:$0xff] (!%p773_p9) }
 0x228   : > { %597 = vst.msk [vmem:[%s985_s30 + $0x10] sm:$0xff] (!%p773_p9), %vm594_vm13, %v588_v45  ;;  %v606_v60 = vld [vmem:[%s993_s10 + $0x18] sm:$0xff] (!%p773_p9)  ;;  %598 = vst.msk [vmem:[%s985_s30 + $0x18] sm:$0xff] (!%p773_p9), %vm594_vm13, %v589_v49  ;;  %v612_v61 = vadd.f32 (!%p773_p9), %v604_v58, %v540_v28  ;;  %v613_v62 = vadd.f32 (!%p773_p9), %v605_v59, %v542_v37  ;;  %v607_v0 = vld [vmem:[%s993_s10 + $0x20] sm:$0xff] (!%p773_p9) }
 0x229   : > { %599 = vst.msk [vmem:[%s985_s30 + $0x20] sm:$0xff] (!%p773_p9), %vm594_vm13, %v590_v50  ;;  %600 = vst.msk [vmem:[%s985_s30 + $0x28] sm:$0xff] (!%p773_p9), %vm594_vm13, %v591_v51  ;;  %v614_v63 = vadd.f32 (!%p773_p9), %v606_v60, %v544_v36  ;;  %v608_v1 = vld [vmem:[%s993_s10 + $0x28] sm:$0xff] (!%p773_p9)  ;;  %v609_v2 = vld [vmem:[%s993_s10 + $0x30] sm:$0xff] (!%p773_p9)  ;;  %v615_v3 = vadd.f32 (!%p773_p9), %v607_v0, %v1051_v31 }
 0x22a   : > { %601 = vst.msk [vmem:[%s985_s30 + $0x30] sm:$0xff] (!%p773_p9), %vm594_vm13, %v592_v55  ;;  %602 = vst.msk [vmem:[%s985_s30 + $0x38] sm:$0xff] (!%p773_p9), %vm594_vm13, %v593_v56  ;;  %v616_v4 = vadd.f32 (!%p773_p9), %v608_v1, %v1049_v30  ;;  %v617_v5 = vadd.f32 (!%p773_p9), %v609_v2, %v550_v39  ;;  %v610_v6 = vld [vmem:[%s993_s10 + $0x38] sm:$0xff] (!%p773_p9) }
 0x22b   : > { %619 = vst.msk [vmem:[%s993_s10] sm:$0xff] (!%p773_p9), %vm594_vm13, %v611_v57  ;;  %620 = vst.msk [vmem:[%s993_s10 + $0x8] sm:$0xff] (!%p773_p9), %vm594_vm13, %v612_v61  ;;  %v618_v7 = vadd.f32 (!%p773_p9), %v610_v6, %v1053_v38 }
 0x22c   : > { %621 = vst.msk [vmem:[%s993_s10 + $0x10] sm:$0xff] %vm594_vm13, %v613_v62  ;;  %622 = vst.msk [vmem:[%s993_s10 + $0x18] sm:$0xff] %vm594_vm13, %v614_v63 }
 0x22d   : > { %623 = vst.msk [vmem:[%s993_s10 + $0x20] sm:$0xff] %vm594_vm13, %v615_v3  ;;  %624 = vst.msk [vmem:[%s993_s10 + $0x28] sm:$0xff] %vm594_vm13, %v616_v4 }
 0x22e   : > { %625 = vst.msk [vmem:[%s993_s10 + $0x30] sm:$0xff] %vm594_vm13, %v617_v5  ;;  %626 = vst.msk [vmem:[%s993_s10 + $0x38] sm:$0xff] %vm594_vm13, %v618_v7 }
 0x22f PF: > { %s15_s19 = sadd.s32 1, %s918_s19   ;;  %s1163_s15 = smov %s910_s17 }
 0x230   : > { %p12_p10 = scmp.ge.s32.totalorder %s15_s19, 16   ;;  %s1164_s16 = smov %s914_s18 }
 0x231   : > { %s1165_s17 = smov %s1168_s20  ;;  %s1166_s18 = smov %s1172_s21 }
 0x232   :  { %14 = sbr.rel (!%p12_p10) target bundleno = 3 (0x3), region = 85 }

</bundles_post_ra>
